<compile_context>
chip_gen: v6e
topology: v6e:2x2x1
jax: 0.10.0
libtpu: 0.0.40
codegen_flags: <defaults>
</compile_context>

<pallas_src>
import functools

import jax
import jax.numpy as jnp
import numpy as np
from jax.experimental import pallas as pl
from jax.experimental.pallas import tpu as pltpu


def _pos_enc_kernel(tab_ref, o_ref, *, ppr):
    # tab_ref: (3, lanes) f32 table  [inv_freq; phase; pos_lane]
    # o_ref:   (tile_rows, lanes) block of the flattened encoding.
    tile_rows, _ = o_ref.shape
    row0 = pl.program_id(0) * tile_rows

    inv_freq = tab_ref[0:1, :]   # (1, lanes)
    phase = tab_ref[1:2, :]      # (1, lanes)
    pos_lane = tab_ref[2:3, :]   # (1, lanes)  lane -> position offset within a row

    # Per-sublane position base: each flat row packs `ppr` consecutive positions.
    r = jax.lax.broadcasted_iota(jnp.int32, (tile_rows, 1), 0)
    pos = ((row0 + r) * ppr).astype(jnp.float32) + pos_lane   # (tile_rows, lanes)

    # Single transcendental per element: cos(x) == sin(x + pi/2).
    o_ref[...] = jnp.sin(pos * inv_freq + phase).astype(o_ref.dtype)


def _choose_layout(seq_len, d_model):
    """Pick a lane-dense flattened layout when possible."""
    if d_model % 128 == 0:
        lanes = d_model                      # already lane-dense
    elif 128 % d_model == 0 and seq_len % (128 // d_model) == 0:
        lanes = 128                          # pack several positions per flat row
    else:
        lanes = d_model                      # fallback (may use masked stores)
    ppr = lanes // d_model                   # positions per flat row
    flat_rows = seq_len // ppr
    return lanes, ppr, flat_rows


def _build_table(d_model, lanes):
    """Host-side f64 -> f32 table: inv_freq, phase, pos_lane per lane."""
    lane = np.arange(lanes)
    col = lane % d_model
    two_i = (col // 2) * 2
    inv_freq = np.exp(-(two_i.astype(np.float64) / d_model) * np.log(10000.0))
    phase = (col % 2).astype(np.float64) * (np.pi / 2.0)
    pos_lane = (lane // d_model).astype(np.float64)
    return np.stack([inv_freq, phase, pos_lane]).astype(np.float32)  # (3, lanes)


def positional_encoding(batch, seq_len, d_model, max_len=None, dtype=jnp.float32):
    """Compute the sinusoid encoding once and broadcast over batch."""
    if max_len is not None:
        assert seq_len <= max_len, "seq_len must not exceed max_len"

    lanes, ppr, flat_rows = _choose_layout(seq_len, d_model)
    table = jnp.asarray(_build_table(d_model, lanes))

    # Tile the flattened row axis: ~2 MiB blocks, sublane dim multiple of 8.
    target_bytes = 2 << 20
    cap_rows = max(8, ((target_bytes // (lanes * 4)) // 8) * 8)
    if flat_rows <= cap_rows:
        tile_rows = flat_rows
        num_tiles = 1
    else:
        tile_rows = cap_rows
        num_tiles = pl.cdiv(flat_rows, tile_rows)

    enc_flat = pl.pallas_call(
        functools.partial(_pos_enc_kernel, ppr=ppr),
        out_shape=jax.ShapeDtypeStruct((flat_rows, lanes), dtype),
        grid_spec=pltpu.PrefetchScalarGridSpec(
            num_scalar_prefetch=0,
            grid=(num_tiles,),
            in_specs=[pl.BlockSpec((3, lanes), lambda i: (0, 0))],
            out_specs=pl.BlockSpec((tile_rows, lanes), lambda i: (i, 0)),
        ),
        compiler_params=pltpu.CompilerParams(
            dimension_semantics=("parallel",),
        ),
    )(table)

    enc = enc_flat.reshape(seq_len, d_model)
    # Batch broadcast is free / fusable in XLA — no per-batch kernel work.
    return jnp.broadcast_to(enc[None, :, :], (batch, seq_len, d_model))


def positional_encoding_forward(x, max_len=None):
    """Mirror of PositionalEncoding.forward. Only x.shape is used (as in PyTorch)."""
    batch, seq_len, d_model = x.shape
    return positional_encoding(batch, seq_len, d_model, max_len=max_len)


def _reference(shape):
    batch, seq_len, d_model = shape
    pos = np.arange(seq_len, dtype=np.float64)[:, None]
    _2i = np.arange(0, d_model, 2, dtype=np.float64)
    enc = np.zeros((seq_len, d_model), dtype=np.float64)
    enc[:, 0::2] = np.sin(pos / 10000.0 ** (_2i / d_model))
    enc[:, 1::2] = np.cos(pos / 10000.0 ** (_2i / d_model))
    return np.broadcast_to(enc[None], (batch, seq_len, d_model)).astype(np.float32)


if __name__ == "__main__":
    key = jax.random.PRNGKey(0)
    batch, seq_len, d_model, max_len = 2, 8, 32, 16
    # Input x: values are irrelevant to the forward (only shape is used),
    # matching the PyTorch module.
    x = jax.random.normal(key, (batch, seq_len, d_model), dtype=jnp.float32)

    out = positional_encoding_forward(x, max_len=max_len)
    out = jax.block_until_ready(out)

    assert out.shape == (batch, seq_len, d_model)
    np.testing.assert_allclose(np.asarray(out), _reference((batch, seq_len, d_model)),
                               rtol=1e-5, atol=1e-5)

    # Extra coverage: lane-dense d_model (multiple of 128) and irregular fallback.
    for (b2, s2, d2) in [(2, 16, 128), (2, 8, 48)]:
        out2 = jax.block_until_ready(positional_encoding(b2, s2, d2))
        np.testing.assert_allclose(np.asarray(out2), _reference((b2, s2, d2)),
                                   rtol=1e-5, atol=2e-5)

    print("KERNEL_OK")
</pallas_src>

<mosaic_0001>
module attributes {stable_mosaic.version = 11 : i64} {
  func.func @_pos_enc_kernel(%arg0: i32, %arg1: memref<3x128xf32, #tpu.memory_space<vmem>>, %arg2: memref<2x128xf32, #tpu.memory_space<vmem>>) attributes {dimension_semantics = [#tpu.dimension_semantics<parallel>], iteration_bounds = array<i64: 1>, scalar_prefetch = 0 : i64, scratch_operands = 0 : i64, tpu.core_type = #tpu.core_type<tc>, window_params = [{pipeline_mode = #tpu.pipeline_mode<synchronous>, transform_indices = @transform_0, window_bounds = array<i64: 3, 128>}, {transform_indices = @transform_1, window_bounds = array<i64: 2, 128>}]} {
    %c2_i32 = arith.constant 2 : i32
    %0 = arith.muli %arg0, %c2_i32 : i32
    %c0 = arith.constant 0 : index
    %c0_0 = arith.constant 0 : index
    %1 = vector.load %arg1[%c0, %c0_0] : memref<3x128xf32, #tpu.memory_space<vmem>>, vector<1x128xf32>
    %c1 = arith.constant 1 : index
    %c0_1 = arith.constant 0 : index
    %2 = vector.load %arg1[%c1, %c0_1] : memref<3x128xf32, #tpu.memory_space<vmem>>, vector<1x128xf32>
    %c2 = arith.constant 2 : index
    %c0_2 = arith.constant 0 : index
    %3 = vector.load %arg1[%c2, %c0_2] : memref<3x128xf32, #tpu.memory_space<vmem>>, vector<1x128xf32>
    %4 = tpu.iota {dimensions = array<i32: 0>} : vector<2x1xi32>
    %5 = vector.broadcast %0 : i32 to vector<2x1xi32>
    %6 = arith.addi %5, %4 : vector<2x1xi32>
    %c4_i32 = arith.constant 4 : i32
    %7 = vector.broadcast %c4_i32 : i32 to vector<2x1xi32>
    %8 = arith.muli %6, %7 : vector<2x1xi32>
    %9 = arith.sitofp %8 : vector<2x1xi32> to vector<2x1xf32>
    %10 = vector.broadcast %9 : vector<2x1xf32> to vector<2x128xf32>
    %11 = vector.broadcast %3 : vector<1x128xf32> to vector<2x128xf32>
    %12 = arith.addf %10, %11 : vector<2x128xf32>
    %13 = vector.broadcast %1 : vector<1x128xf32> to vector<2x128xf32>
    %14 = arith.mulf %12, %13 : vector<2x128xf32>
    %15 = vector.broadcast %2 : vector<1x128xf32> to vector<2x128xf32>
    %16 = arith.addf %14, %15 : vector<2x128xf32>
    %17 = math.sin %16 : vector<2x128xf32>
    %c0_3 = arith.constant 0 : index
    %c0_4 = arith.constant 0 : index
    %18 = vector.load %arg2[%c0_3, %c0_4] : memref<2x128xf32, #tpu.memory_space<vmem>>, vector<2x128xf32>
    tpu.vector_store %arg2[%c0_3, %c0_4], %17 {strides = array<i32>} : memref<2x128xf32, #tpu.memory_space<vmem>>, vector<2x128xf32>,
    return
  }
  func.func @transform_0(%arg0: i32) -> (i32, i32) {
    %c0_i32 = arith.constant 0 : i32
    %c0_i32_0 = arith.constant 0 : i32
    %c0_i32_1 = arith.constant 0 : i32
    return %c0_i32, %c0_i32_0 : i32, i32
  }
  func.func @transform_1(%arg0: i32) -> (i32, i32) {
    %c0_i32 = arith.constant 0 : i32
    %c0_i32_0 = arith.constant 0 : i32
    return %arg0, %c0_i32 : i32, i32
  }
}

</mosaic_0001>

<bundles_post_ra>
// kernel: tpu_custom_call.1
= control target key start
LH: loop header
LB: loop body
LE: loop exit
PB: predicated region body
PF: predicated region fallthrough
CT: control target
= control target key end

     0   :  { %6 = vsyncpa [#allocation3], 0  ;;  %s278_s0 = inlined_call_operand.hbm [shape: f32[3,128], index: 0, kind: input, shape index: {}]   ;;  %s279_s1 = inlined_call_operand.hbm [shape: f32[2,128], index: 1, kind: output, shape index: {}]  }
   0x1   :  { %7 = vsyncpa [#allocation4], 0  ;;  %s233_s6 = smov [#allocation2]  }
   0x2   :  { %s14_s7 = sshll.u32 %s233_s6, 4  ;;  %s15_s7 = int_to_ptr.vmem [resolvable:$true] %s14_s7 }
   0x3   :  { %s197_s8 = scalar_lea.vmem %s15_s7, 64  ;;  %p202_p1 = scmp.lt.s32.totalorder %s15_s7, %s15_s7 }
   0x4   :  { %p198_p0 = scmp.ne.s32.totalorder %s15_s7, %s197_s8  ;;  %p203_p2 = scmp.lt.s32.totalorder %s197_s8, %s197_s8 }
   0x6   :  { %p204_p3 = por %p203_p2, %p202_p1 }
   0x8   :  { %p205_p4 = pnand %p204_p3, %p198_p0 }
   0xa   :  { %208 = shalt.err (!%p205_p4)
}
   0xb   :  { %17 = dma.hbm_to_vmem [thread:$0]  %s278_s0, 64, %s15_s7, [#allocation3]  }
   0xc   :  { %229 = dma.done.wait [#allocation3], 64  }
   0xd   :  { %230 = vsyncadd [#allocation3], 4294967232  ;;  %v25_v0 = vlaneseq  ;;  %v167_v4 = vld [vmem:[#allocation2] ss:$0 sm:$0xff]  ;;  %v166_v5 = vld [vmem:[#allocation2 + $0x2] ss:$0 sm:$0xff] }
   0xe   :  { %v168_v7 = vld [vmem:[#allocation2 + $0x1] ss:$0 sm:$0xff]  ;;  %v234_v21 = vmov 683565275   ;;  %v235_v23 = vmov 2475754826  }
   0xf   :  { %v26_v1 = vshrl.u32 %v25_v0, 7  ;;  %v236_v25 = vmov 2131351028   ;;  %v237_v27 = vmov 2102212464   ;;  %s240_s0 = smov [#allocation5]  }
  0x10   :  { %v238_v29 = vmov 920167782   ;;  %v239_v36 = vmov 1326507024   ;;  %s157_s11 = sshll.u32 %s240_s0, 4  ;;  %s158_s11 = int_to_ptr.vmem [resolvable:$true] %s157_s11 }
  0x11   :  { %v29_v2 = vmul.u32 4, %v26_v1  ;;  %s209_s12 = scalar_lea.vmem %s158_s11, 32  ;;  %p214_p6 = scmp.lt.s32.totalorder %s158_s11, %s158_s11 }
  0x12   :  { %p210_p5 = scmp.ne.s32.totalorder %s158_s11, %s209_s12  ;;  %p215_p7 = scmp.lt.s32.totalorder %s209_s12, %s209_s12 }
  0x13   :  { %v30_v3 = vcvt.s32.f32 %v29_v2 }
  0x14   :  { %p216_p8 = por %p215_p7, %p214_p6 }
  0x15   :  { %v35_v6 = vadd.f32 %v166_v5, %v30_v3 }
  0x16   :  { %p217_p9 = pnand %p216_p8, %p210_p5 }
  0x17   :  { %v40_v8 = vmul.f32 %v167_v4, %v35_v6 }
  0x19   :  { %v254_v9 = vadd.f32 %v168_v7, %v40_v8 }
  0x1b   :  { %v49_v10 = vand.u32 2139095040, %v254_v9  ;;  %v46_v12 = vand.u32 2147483647, %v254_v9  ;;  %vm48_vm7 = vcmp.lt.s32.totalorder %v254_v9, 0  ;;  %vm138_vm12 = vweird.f32 %v254_v9 }
  0x1d   :  { %v50_v11 = vshrl.u32 %v49_v10, 23  ;;  %v53_v15 = vand.u32 8388607, %v46_v12  ;;  %vm47_vm8 = vcmp.le.f32.partialorder %v46_v12, 0.7853982 }
  0x1f   :  { %v169_v13 = vadd.s32 4294967169, %v50_v11  ;;  %v54_v18 = vor.u32 8388608, %v53_v15 }
  0x21   :  { %v56_v14 = vadd.s32 1, %v169_v13  ;;  %v94_v38 = vshll.u32 %v54_v18, 8 }
  0x23   :  { %vm57_vm0 = vcmp.gt.s32.totalorder %v56_v14, 0 }
  0x24   :  { %v58_v16 = vsel %vm57_vm0, %v56_v14, 0 }
  0x25   :  { %v60_v17 = vand.u32 31, %v58_v16  ;;  %v59_v19 = vshrl.u32 %v58_v16, 5 }
  0x27   :  { %v61_v20 = vsub.s32 32, %v60_v17  ;;  %v63_v22 = vshll.u32 %v234_v21, %v60_v17  ;;  %v66_v24 = vshll.u32 %v235_v23, %v60_v17  ;;  %v69_v26 = vshll.u32 %v236_v25, %v60_v17 }
  0x28   :  { %v72_v28 = vshll.u32 %v237_v27, %v60_v17  ;;  %v75_v30 = vshll.u32 %v238_v29, %v60_v17  ;;  %vm78_vm1 = vcmp.lt.s32.totalorder %v59_v19, 1  ;;  %vm81_vm2 = vcmp.lt.s32.totalorder %v59_v19, 4 }
  0x29   :  { %v62_v31 = vshrl.u32 %v234_v21, %v61_v20  ;;  %v64_v32 = vshrl.u32 %v235_v23, %v61_v20  ;;  %v67_v33 = vshrl.u32 %v236_v25, %v61_v20  ;;  %v70_v34 = vshrl.u32 %v237_v27, %v61_v20 }
  0x2a   :  { %v73_v35 = vshrl.u32 %v238_v29, %v61_v20  ;;  %v76_v37 = vshrl.u32 %v239_v36, %v61_v20  ;;  %vm79_vm3 = vcmp.lt.s32.totalorder %v59_v19, 2  ;;  %vm80_vm4 = vcmp.lt.s32.totalorder %v59_v19, 3 }
  0x2b   :  { %v65_v39 = vor.u32 %v64_v32, %v63_v22  ;;  %v68_v40 = vor.u32 %v67_v33, %v66_v24  ;;  %v71_v41 = vor.u32 %v70_v34, %v69_v26 }
  0x2c   :  { %v74_v42 = vor.u32 %v73_v35, %v72_v28  ;;  %v77_v43 = vor.u32 %v76_v37, %v75_v30 }
  0x2d   :  { %v82_v44 = vsel %vm78_vm1, %v62_v31, %v65_v39  ;;  %v83_v45 = vsel %vm81_vm2, %v71_v41, 2102212464  ;;  %v86_v46 = vsel %vm78_vm1, %v65_v39, %v68_v40  ;;  %v90_v47 = vsel %vm78_vm1, %v68_v40, %v71_v41 }
  0x2e   :  { %v84_v48 = vsel %vm80_vm4, %v68_v40, %v83_v45  ;;  %v87_v49 = vsel %vm81_vm2, %v74_v42, 920167782  ;;  %v91_v50 = vsel %vm81_vm2, %v77_v43, 1326507024 }
  0x2f   :  { %v88_v51 = vsel %vm80_vm4, %v71_v41, %v87_v49  ;;  %v92_v52 = vsel %vm80_vm4, %v74_v42, %v91_v50  ;;  %v85_v53 = vsel %vm79_vm3, %v82_v44, %v84_v48 }
  0x30   :  { %v89_v54 = vsel %vm79_vm3, %v86_v46, %v88_v51  ;;  %v93_v55 = vsel %vm79_vm3, %v90_v47, %v92_v52  ;;  %v101_v60 = vmul.u32 %v94_v38, %v85_v53 }
  0x31   :  { %v260_v56 = vmul.u32.u64.low %v94_v38, %v93_v55  ;;  %v261_v57 = vmul.u32.u64.high %v94_v38, %v93_v55, %v260_v56  ;;  %v263_v58 = vmul.u32.u64.low %v94_v38, %v89_v54  ;;  %v264_v59 = vmul.u32.u64.high %v94_v38, %v89_v54, %v263_v58 }
  0x33   :  { %vm103_vm5 = vc.u32 %v261_v57, %v263_v58  ;;  %v104_v61 = vadd.s32 1, %v264_v59  ;;  %v102_v8 = vadd.s32 %v263_v58, %v261_v57 }
  0x35   :  { %v105_v62 = vsel %vm103_vm5, %v104_v61, %v264_v59 }
  0x36   :  { %v106_v63 = vadd.s32 %v105_v62, %v101_v60 }
  0x38   :  { %v107_v0 = vadd.s32 536870912, %v106_v63 }
  0x3a   :  { %v108_v1 = vshrl.u32 %v107_v0, 30 }
  0x3c   :  { %v109_v2 = vshll.u32 %v108_v1, 30  ;;  %v132_v23 = vsub.s32 4, %v108_v1 }
  0x3e   :  { %v110_v3 = vsub.s32 %v106_v63, %v109_v2  ;;  %v133_v26 = vsel %vm48_vm7, %v132_v23, %v108_v1 }
  0x3f   :  { %v135_v28 = vsel %vm47_vm8, 0, %v133_v26 }
  0x40   :  { %v112_v4 = vsub.s32 0, %v110_v3  ;;  %v139_v29 = vadd.s32 3, %v135_v28 }
  0x42   :  { %v170_v5 = vmin.u32 %v112_v4, %v110_v3  ;;  %v140_v30 = vand.u32 3, %v139_v29 }
  0x44   :  { %v114_v6 = vclz %v170_v5  ;;  %vm145_vm9 = vcmp.eq.s32.totalorder %v140_v30, 2  ;;  %vm142_vm10 = vcmp.eq.s32.totalorder %v140_v30, 0  ;;  %vm141_vm11 = vcmp.lt.s32.totalorder %v140_v30, 2 }
  0x46   :  { %v171_v7 = vadd.s32 4294967294, %v114_v6 }
  0x48   :  { %vm172_vm6 = vcmp.lt.s32.totalorder %v171_v7, 0 }
  0x49   :  { %v117_v10 = vsel %vm172_vm6, 0, %v171_v7 }
  0x4a   :  { %v118_v11 = vsub.s32 32, %v117_v10  ;;  %v119_v13 = vshll.u32 %v110_v3, %v117_v10  ;;  %v122_v14 = vsub.s32 4294967266, %v117_v10 }
  0x4c   :  { %v120_v15 = vshrl.u32 %v102_v8, %v118_v11  ;;  %v123_v16 = vadd.s32 127, %v122_v14 }
  0x4e   :  { %v121_v17 = vor.u32 %v120_v15, %v119_v13  ;;  %v124_v18 = vshll.u32 %v123_v16, 23 }
  0x50   :  { %v125_v19 = vor.u32 4788187, %v124_v18  ;;  %v128_v20 = vcvt.s32.f32 %v121_v17 }
  0x52   :  { %v126_v21 = vand.u32 2147483647, %v125_v19 }
  0x54   :  { %v129_v22 = vmul.f32 %v128_v20, %v126_v21 }
  0x56   :  { %v130_v24 = vxor.u32 2147483648, %v129_v22 }
  0x58   :  { %v131_v25 = vsel %vm48_vm7, %v130_v24, %v129_v22 }
  0x59   :  { %v134_v27 = vsel %vm47_vm8, %v254_v9, %v131_v25 }
  0x5a   :  { %185 = vcosq.f32 %v134_v27 }
  0x5b   :  { %187 = vsinq.f32 %v134_v27 }
  0x67   :  { %v186_v31 = vpop.eup %185 }
  0x68   :  { %v188_v32 = vpop.eup %187  ;;  %v146_v33 = vxor.u32 2147483648, %v186_v31 }
  0x69   :  { %v143_v34 = vxor.u32 2147483648, %v188_v32 }
  0x6a   :  { %v147_v12 = vsel %vm145_vm9, %v146_v33, %v188_v32 }
  0x6b   :  { %v144_v35 = vsel %vm142_vm10, %v186_v31, %v143_v34 }
  0x6c   :  { %v148_v36 = vsel %vm141_vm11, %v144_v35, %v147_v12 }
  0x6d   :  { %v149_v37 = vsel %vm138_vm12, nan, %v148_v36 }
  0x6e   :  { %150 = vst [vmem:[#allocation5] sm:$0x3] %v149_v37 }
  0x6f   :  { %220 = shalt.err (!%p217_p9)
}
  0x70   :  { %160 = dma.vmem_to_hbm [thread:$0]  %s158_s11, 32, %s279_s1, [#allocation4]  }
  0x71   :  { %231 = dma.done.wait [#allocation4], 32  }
  0x72   :  { %232 = vsyncadd [#allocation4], 4294967264 }
  0x73   :  { %164 = vsyncpa [#allocation3], 1 }
  0x74   :  { %165 = vsyncpa [#allocation4], 1 }

</bundles_post_ra>
